<compile_context>
chip_gen: v6e
topology: v6e:2x2x1
jax: 0.10.0
libtpu: 0.0.40
codegen_flags: <defaults>
</compile_context>

<pallas_src>
import math

import jax
import jax.numpy as jnp
from jax.experimental import pallas as pl
from jax.experimental.pallas import tpu as pltpu


def _round_up(a, b):
    return (a + b - 1) // b * b


def _mlp_kernel(x_ref, w1_ref, b1_ref, w2_ref, b2_ref, o_ref, h_ref):
    """Fused fc1 -> exact GELU -> fc2 for one row tile of tokens."""
    x = x_ref[...]                                              # [tm, Cin]
    # fc1 on the MXU, f32 accumulation
    h = jnp.dot(x, w1_ref[...], preferred_element_type=jnp.float32)
    h = h + b1_ref[...]                                         # [tm, H] f32
    # exact (erf-based) GELU -> matches torch.nn.GELU() default numerics
    inv_sqrt2 = jnp.float32(1.0 / math.sqrt(2.0))
    h_ref[...] = 0.5 * h * (1.0 + jax.lax.erf(h * inv_sqrt2))   # f32 scratch
    # dropout(p=0.0) is the identity -> nothing to do
    # fc2 on the MXU, f32 accumulation; feed MXU in the input dtype
    o = jnp.dot(h_ref[...].astype(x.dtype), w2_ref[...],
                preferred_element_type=jnp.float32)
    o_ref[...] = (o + b2_ref[...]).astype(o_ref.dtype)          # [tm, Cout]


def _build_and_call(x2, w1p, b1_2, w2p, b2_2, *, tm, vmem_limit,
                    single_buffer_weights):
    M_pad, Cin_p = x2.shape
    H_p = w1p.shape[1]
    Cout_p = w2p.shape[1]
    grid = (M_pad // tm,)

    const_kw = {}
    if single_buffer_weights:
        # Grid-invariant operands: no need for double-buffered VMEM windows.
        const_kw = dict(pipeline_mode=pl.Buffered(1))

    itemsize = jnp.dtype(x2.dtype).itemsize
    cost = pl.CostEstimate(
        flops=2 * M_pad * (Cin_p * H_p + H_p * Cout_p),
        transcendentals=M_pad * H_p,
        bytes_accessed=(x2.size + w1p.size + b1_2.size + w2p.size
                        + b2_2.size + M_pad * Cout_p) * itemsize,
    )

    return pl.pallas_call(
        _mlp_kernel,
        out_shape=jax.ShapeDtypeStruct((M_pad, Cout_p), x2.dtype),
        grid_spec=pltpu.PrefetchScalarGridSpec(
            num_scalar_prefetch=0,
            grid=grid,
            in_specs=[
                pl.BlockSpec((tm, Cin_p), lambda i: (i, 0)),               # x tile
                pl.BlockSpec((Cin_p, H_p), lambda i: (0, 0), **const_kw),  # w1
                pl.BlockSpec((1, H_p), lambda i: (0, 0), **const_kw),      # b1
                pl.BlockSpec((H_p, Cout_p), lambda i: (0, 0), **const_kw), # w2
                pl.BlockSpec((1, Cout_p), lambda i: (0, 0), **const_kw),   # b2
            ],
            out_specs=pl.BlockSpec((tm, Cout_p), lambda i: (i, 0)),
            scratch_shapes=[pltpu.VMEM((tm, H_p), jnp.float32)],           # fc1 act
        ),
        compiler_params=pltpu.CompilerParams(
            dimension_semantics=("parallel",),
            vmem_limit_bytes=int(vmem_limit)),
        cost_estimate=cost,
    )(x2, w1p, b1_2, w2p, b2_2)


def mlp_pallas(x, w1, b1, w2, b2, *, tile_m=256):
    """x: (..., Cin). Weights pre-transposed: w1 [Cin, H], w2 [H, Cout]."""
    Cin = x.shape[-1]
    H = w1.shape[1]
    Cout = w2.shape[1]
    lead = x.shape[:-1]
    M = 1
    for s in lead:
        M *= s

    # Lane-dense feature dims: pad to multiples of 128.
    Cin_p = _round_up(Cin, 128)
    H_p = _round_up(H, 128)
    Cout_p = _round_up(Cout, 128)

    # Dtype-aware sublane multiple for the row tile (f32->8, bf16->16, int8->32).
    itemsize = jnp.dtype(x.dtype).itemsize
    sub = 8 * max(1, 4 // itemsize)
    tm = min(_round_up(tile_m, sub), _round_up(M, sub))

    # Explicit VMEM budget (chip-aware, leave headroom).
    try:
        vmem_cap = pltpu.get_tpu_info().vmem_capacity_bytes
    except Exception:
        vmem_cap = 64 * 1024 * 1024          # conservative (v7x-sized) default
    vmem_limit = min(96 * 1024 * 1024, (vmem_cap * 3) // 4)

    # Rough footprint: resident weights + double-buffered x/out tiles + f32 scratch.
    def footprint(t):
        weights = (Cin_p * H_p + H_p + H_p * Cout_p + Cout_p) * itemsize
        io = 2 * t * (Cin_p + Cout_p) * itemsize
        scratch = t * H_p * 4
        return weights + io + scratch

    while tm > sub and footprint(tm) > vmem_limit:
        tm = max(sub, _round_up(tm // 2, sub))
    # TODO(synk): if the resident weights alone exceed the VMEM budget (very
    # large H on v7x's 64 MiB), add a hidden-dim grid axis ("arbitrary", last)
    # blocking w1 cols / w2 rows with an f32 accumulator + pl.when init/finalize.

    M_pad = _round_up(M, tm)

    x2 = x.reshape(M, Cin)
    x2 = jnp.pad(x2, ((0, M_pad - M), (0, Cin_p - Cin)))
    w1p = jnp.pad(w1, ((0, Cin_p - Cin), (0, H_p - H)))
    w2p = jnp.pad(w2, ((0, H_p - H), (0, Cout_p - Cout)))
    b1_2 = jnp.pad(b1, (0, H_p - H)).reshape(1, H_p)
    b2_2 = jnp.pad(b2, (0, Cout_p - Cout)).reshape(1, Cout_p)

    try:
        out = _build_and_call(x2, w1p, b1_2, w2p, b2_2, tm=tm,
                              vmem_limit=vmem_limit,
                              single_buffer_weights=True)
    except Exception:
        # pipeline_mode=pl.Buffered(1) not supported on this jax build; fall
        # back to default (double-buffered) weight windows — same semantics.
        out = _build_and_call(x2, w1p, b1_2, w2p, b2_2, tm=tm,
                              vmem_limit=vmem_limit,
                              single_buffer_weights=False)

    return out[:M, :Cout].reshape(*lead, Cout)


def init_mlp_params(key, in_features, hidden_features, out_features,
                    dtype=jnp.float32):
    """Deterministic init mimicking nn.Linear (uniform +-1/sqrt(fan_in)).
    Weights are returned pre-transposed: [fan_in, fan_out]."""
    k1, k2, k3, k4 = jax.random.split(key, 4)
    lim1 = 1.0 / math.sqrt(in_features)
    lim2 = 1.0 / math.sqrt(hidden_features)
    w1 = jax.random.uniform(k1, (in_features, hidden_features),
                            dtype, -lim1, lim1)
    b1 = jax.random.uniform(k2, (hidden_features,), dtype, -lim1, lim1)
    w2 = jax.random.uniform(k3, (hidden_features, out_features),
                            dtype, -lim2, lim2)
    b2 = jax.random.uniform(k4, (out_features,), dtype, -lim2, lim2)
    return w1, b1, w2, b2


def mlp_reference(x, w1, b1, w2, b2):
    """Pure-JAX reference for correctness check (same math)."""
    h = x @ w1 + b1
    h = 0.5 * h * (1.0 + jax.lax.erf(h / jnp.sqrt(2.0).astype(h.dtype)))
    return h @ w2 + b2


if __name__ == "__main__":
    key = jax.random.PRNGKey(0)
    kx, kp = jax.random.split(key)

    # Small shapes consistent with a transformer-style Mlp: (batch, seq, C)
    batch, seq = 2, 8
    in_features, hidden_features, out_features = 32, 64, 32

    x = jax.random.normal(kx, (batch, seq, in_features), jnp.float32)
    w1, b1, w2, b2 = init_mlp_params(kp, in_features, hidden_features,
                                     out_features)

    y = mlp_pallas(x, w1, b1, w2, b2)
    y = jax.block_until_ready(y)

    # sanity check against pure-JAX reference
    y_ref = mlp_reference(x, w1, b1, w2, b2)
    assert y.shape == (batch, seq, out_features)
    assert jnp.allclose(y, y_ref, atol=1e-5, rtol=1e-5), "mismatch vs reference"

    print("KERNEL_OK")
</pallas_src>

<mosaic_0001>
module attributes {stable_mosaic.version = 11 : i64} {
  func.func @_mlp_kernel(%arg0: i32, %arg1: memref<16x128xf32, #tpu.memory_space<vmem>>, %arg2: memref<128x128xf32, #tpu.memory_space<vmem>>, %arg3: memref<1x128xf32, #tpu.memory_space<vmem>>, %arg4: memref<128x128xf32, #tpu.memory_space<vmem>>, %arg5: memref<1x128xf32, #tpu.memory_space<vmem>>, %arg6: memref<16x128xf32, #tpu.memory_space<vmem>>, %arg7: memref<16x128xf32, #tpu.memory_space<vmem>>) attributes {dimension_semantics = [#tpu.dimension_semantics<parallel>], iteration_bounds = array<i64: 1>, scalar_prefetch = 0 : i64, scratch_operands = 1 : i64, tpu.core_type = #tpu.core_type<tc>, window_params = [{transform_indices = @transform_0, window_bounds = array<i64: 16, 128>}, {pipeline_mode = #tpu.pipeline_mode<synchronous>, transform_indices = @transform_1, window_bounds = array<i64: 128, 128>}, {pipeline_mode = #tpu.pipeline_mode<synchronous>, transform_indices = @transform_2, window_bounds = array<i64: 1, 128>}, {pipeline_mode = #tpu.pipeline_mode<synchronous>, transform_indices = @transform_3, window_bounds = array<i64: 128, 128>}, {pipeline_mode = #tpu.pipeline_mode<synchronous>, transform_indices = @transform_4, window_bounds = array<i64: 1, 128>}, {transform_indices = @transform_5, window_bounds = array<i64: 16, 128>}]} {
    %c0 = arith.constant 0 : index
    %c0_0 = arith.constant 0 : index
    %0 = vector.load %arg1[%c0, %c0_0] : memref<16x128xf32, #tpu.memory_space<vmem>>, vector<16x128xf32>
    %c0_1 = arith.constant 0 : index
    %c0_2 = arith.constant 0 : index
    %1 = vector.load %arg2[%c0_1, %c0_2] : memref<128x128xf32, #tpu.memory_space<vmem>>, vector<128x128xf32>
    %cst = arith.constant dense<0.000000e+00> : vector<16x128xf32>
    %2 = tpu.matmul %0, %1, %cst {dimension_numbers = #tpu.dot_dimension_numbers<[1], [0], [0], [1], [0, 0, 1, 1], [], []>} : vector<16x128xf32>, vector<128x128xf32>, vector<16x128xf32> -> vector<16x128xf32>
    %c0_3 = arith.constant 0 : index
    %c0_4 = arith.constant 0 : index
    %3 = vector.load %arg3[%c0_3, %c0_4] : memref<1x128xf32, #tpu.memory_space<vmem>>, vector<1x128xf32>
    %4 = vector.broadcast %3 : vector<1x128xf32> to vector<16x128xf32>
    %5 = arith.addf %2, %4 : vector<16x128xf32>
    %cst_5 = arith.constant 5.000000e-01 : f32
    %6 = vector.broadcast %cst_5 : f32 to vector<16x128xf32>
    %7 = arith.mulf %6, %5 : vector<16x128xf32>
    %cst_6 = arith.constant 0.707106769 : f32
    %8 = vector.broadcast %cst_6 : f32 to vector<16x128xf32>
    %9 = arith.mulf %5, %8 : vector<16x128xf32>
    %10 = math.erf %9 : vector<16x128xf32>
    %cst_7 = arith.constant 1.000000e+00 : f32
    %11 = vector.broadcast %cst_7 : f32 to vector<16x128xf32>
    %12 = arith.addf %11, %10 : vector<16x128xf32>
    %13 = arith.mulf %7, %12 : vector<16x128xf32>
    %c0_8 = arith.constant 0 : index
    %c0_9 = arith.constant 0 : index
    %14 = vector.load %arg7[%c0_8, %c0_9] : memref<16x128xf32, #tpu.memory_space<vmem>>, vector<16x128xf32>
    tpu.vector_store %arg7[%c0_8, %c0_9], %13 {strides = array<i32>} : memref<16x128xf32, #tpu.memory_space<vmem>>, vector<16x128xf32>,
    %c0_10 = arith.constant 0 : index
    %c0_11 = arith.constant 0 : index
    %15 = vector.load %arg7[%c0_10, %c0_11] : memref<16x128xf32, #tpu.memory_space<vmem>>, vector<16x128xf32>
    %c0_12 = arith.constant 0 : index
    %c0_13 = arith.constant 0 : index
    %16 = vector.load %arg4[%c0_12, %c0_13] : memref<128x128xf32, #tpu.memory_space<vmem>>, vector<128x128xf32>
    %cst_14 = arith.constant dense<0.000000e+00> : vector<16x128xf32>
    %17 = tpu.matmul %15, %16, %cst_14 {dimension_numbers = #tpu.dot_dimension_numbers<[1], [0], [0], [1], [0, 0, 1, 1], [], []>} : vector<16x128xf32>, vector<128x128xf32>, vector<16x128xf32> -> vector<16x128xf32>
    %c0_15 = arith.constant 0 : index
    %c0_16 = arith.constant 0 : index
    %18 = vector.load %arg5[%c0_15, %c0_16] : memref<1x128xf32, #tpu.memory_space<vmem>>, vector<1x128xf32>
    %19 = vector.broadcast %18 : vector<1x128xf32> to vector<16x128xf32>
    %20 = arith.addf %17, %19 : vector<16x128xf32>
    %c0_17 = arith.constant 0 : index
    %c0_18 = arith.constant 0 : index
    %21 = vector.load %arg6[%c0_17, %c0_18] : memref<16x128xf32, #tpu.memory_space<vmem>>, vector<16x128xf32>
    tpu.vector_store %arg6[%c0_17, %c0_18], %20 {strides = array<i32>} : memref<16x128xf32, #tpu.memory_space<vmem>>, vector<16x128xf32>,
    return
  }
  func.func @transform_0(%arg0: i32) -> (i32, i32) {
    %c0_i32 = arith.constant 0 : i32
    %c0_i32_0 = arith.constant 0 : i32
    return %arg0, %c0_i32 : i32, i32
  }
  func.func @transform_1(%arg0: i32) -> (i32, i32) {
    %c0_i32 = arith.constant 0 : i32
    %c0_i32_0 = arith.constant 0 : i32
    %c0_i32_1 = arith.constant 0 : i32
    return %c0_i32, %c0_i32_0 : i32, i32
  }
  func.func @transform_2(%arg0: i32) -> (i32, i32) {
    %c0_i32 = arith.constant 0 : i32
    %c0_i32_0 = arith.constant 0 : i32
    %c0_i32_1 = arith.constant 0 : i32
    return %c0_i32, %c0_i32_0 : i32, i32
  }
  func.func @transform_3(%arg0: i32) -> (i32, i32) {
    %c0_i32 = arith.constant 0 : i32
    %c0_i32_0 = arith.constant 0 : i32
    %c0_i32_1 = arith.constant 0 : i32
    return %c0_i32, %c0_i32_0 : i32, i32
  }
  func.func @transform_4(%arg0: i32) -> (i32, i32) {
    %c0_i32 = arith.constant 0 : i32
    %c0_i32_0 = arith.constant 0 : i32
    %c0_i32_1 = arith.constant 0 : i32
    return %c0_i32, %c0_i32_0 : i32, i32
  }
  func.func @transform_5(%arg0: i32) -> (i32, i32) {
    %c0_i32 = arith.constant 0 : i32
    %c0_i32_0 = arith.constant 0 : i32
    return %arg0, %c0_i32 : i32, i32
  }
}

module attributes {stable_mosaic.version = 11 : i64} {
  func.func @_mlp_kernel(%arg0: i32, %arg1: memref<16x128xf32, #tpu.memory_space<vmem>>, %arg2: memref<128x128xf32, #tpu.memory_space<vmem>>, %arg3: memref<1x128xf32, #tpu.memory_space<vmem>>, %arg4: memref<128x128xf32, #tpu.memory_space<vmem>>, %arg5: memref<1x128xf32, #tpu.memory_space<vmem>>, %arg6: memref<16x128xf32, #tpu.memory_space<vmem>>, %arg7: memref<16x128xf32, #tpu.memory_space<vmem>>) attributes {dimension_semantics = [#tpu.dimension_semantics<parallel>], iteration_bounds = array<i64: 1>, scalar_prefetch = 0 : i64, scratch_operands = 1 : i64, tpu.core_type = #tpu.core_type<tc>, window_params = [{transform_indices = @transform_0, window_bounds = array<i64: 16, 128>}, {pipeline_mode = #tpu.pipeline_mode<synchronous>, transform_indices = @transform_1, window_bounds = array<i64: 128, 128>}, {pipeline_mode = #tpu.pipeline_mode<synchronous>, transform_indices = @transform_2, window_bounds = array<i64: 1, 128>}, {pipeline_mode = #tpu.pipeline_mode<synchronous>, transform_indices = @transform_3, window_bounds = array<i64: 128, 128>}, {pipeline_mode = #tpu.pipeline_mode<synchronous>, transform_indices = @transform_4, window_bounds = array<i64: 1, 128>}, {transform_indices = @transform_5, window_bounds = array<i64: 16, 128>}]} {
    %c0 = arith.constant 0 : index
    %c0_0 = arith.constant 0 : index
    %0 = vector.load %arg1[%c0, %c0_0] : memref<16x128xf32, #tpu.memory_space<vmem>>, vector<16x128xf32>
    %c0_1 = arith.constant 0 : index
    %c0_2 = arith.constant 0 : index
    %1 = vector.load %arg2[%c0_1, %c0_2] : memref<128x128xf32, #tpu.memory_space<vmem>>, vector<128x128xf32>
    %cst = arith.constant dense<0.000000e+00> : vector<16x128xf32>
    %2 = tpu.matmul %0, %1, %cst {dimension_numbers = #tpu.dot_dimension_numbers<[1], [0], [0], [1], [0, 0, 1, 1], [], []>} : vector<16x128xf32>, vector<128x128xf32>, vector<16x128xf32> -> vector<16x128xf32>
    %c0_3 = arith.constant 0 : index
    %c0_4 = arith.constant 0 : index
    %3 = vector.load %arg3[%c0_3, %c0_4] : memref<1x128xf32, #tpu.memory_space<vmem>>, vector<1x128xf32>
    %4 = vector.broadcast %3 : vector<1x128xf32> to vector<16x128xf32>
    %5 = arith.addf %2, %4 : vector<16x128xf32>
    %cst_5 = arith.constant 5.000000e-01 : f32
    %6 = vector.broadcast %cst_5 : f32 to vector<16x128xf32>
    %7 = arith.mulf %6, %5 : vector<16x128xf32>
    %cst_6 = arith.constant 0.707106769 : f32
    %8 = vector.broadcast %cst_6 : f32 to vector<16x128xf32>
    %9 = arith.mulf %5, %8 : vector<16x128xf32>
    %10 = math.erf %9 : vector<16x128xf32>
    %cst_7 = arith.constant 1.000000e+00 : f32
    %11 = vector.broadcast %cst_7 : f32 to vector<16x128xf32>
    %12 = arith.addf %11, %10 : vector<16x128xf32>
    %13 = arith.mulf %7, %12 : vector<16x128xf32>
    %c0_8 = arith.constant 0 : index
    %c0_9 = arith.constant 0 : index
    %14 = vector.load %arg7[%c0_8, %c0_9] : memref<16x128xf32, #tpu.memory_space<vmem>>, vector<16x128xf32>
    tpu.vector_store %arg7[%c0_8, %c0_9], %13 {strides = array<i32>} : memref<16x128xf32, #tpu.memory_space<vmem>>, vector<16x128xf32>,
    %c0_10 = arith.constant 0 : index
    %c0_11 = arith.constant 0 : index
    %15 = vector.load %arg7[%c0_10, %c0_11] : memref<16x128xf32, #tpu.memory_space<vmem>>, vector<16x128xf32>
    %c0_12 = arith.constant 0 : index
    %c0_13 = arith.constant 0 : index
    %16 = vector.load %arg4[%c0_12, %c0_13] : memref<128x128xf32, #tpu.memory_space<vmem>>, vector<128x128xf32>
    %cst_14 = arith.constant dense<0.000000e+00> : vector<16x128xf32>
    %17 = tpu.matmul %15, %16, %cst_14 {dimension_numbers = #tpu.dot_dimension_numbers<[1], [0], [0], [1], [0, 0, 1, 1], [], []>} : vector<16x128xf32>, vector<128x128xf32>, vector<16x128xf32> -> vector<16x128xf32>
    %c0_15 = arith.constant 0 : index
    %c0_16 = arith.constant 0 : index
    %18 = vector.load %arg5[%c0_15, %c0_16] : memref<1x128xf32, #tpu.memory_space<vmem>>, vector<1x128xf32>
    %19 = vector.broadcast %18 : vector<1x128xf32> to vector<16x128xf32>
    %20 = arith.addf %17, %19 : vector<16x128xf32>
    %c0_17 = arith.constant 0 : index
    %c0_18 = arith.constant 0 : index
    %21 = vector.load %arg6[%c0_17, %c0_18] : memref<16x128xf32, #tpu.memory_space<vmem>>, vector<16x128xf32>
    tpu.vector_store %arg6[%c0_17, %c0_18], %20 {strides = array<i32>} : memref<16x128xf32, #tpu.memory_space<vmem>>, vector<16x128xf32>,
    return
  }
  func.func @transform_0(%arg0: i32) -> (i32, i32) {
    %c0_i32 = arith.constant 0 : i32
    %c0_i32_0 = arith.constant 0 : i32
    return %arg0, %c0_i32 : i32, i32
  }
  func.func @transform_1(%arg0: i32) -> (i32, i32) {
    %c0_i32 = arith.constant 0 : i32
    %c0_i32_0 = arith.constant 0 : i32
    %c0_i32_1 = arith.constant 0 : i32
    return %c0_i32, %c0_i32_0 : i32, i32
  }
  func.func @transform_2(%arg0: i32) -> (i32, i32) {
    %c0_i32 = arith.constant 0 : i32
    %c0_i32_0 = arith.constant 0 : i32
    %c0_i32_1 = arith.constant 0 : i32
    return %c0_i32, %c0_i32_0 : i32, i32
  }
  func.func @transform_3(%arg0: i32) -> (i32, i32) {
    %c0_i32 = arith.constant 0 : i32
    %c0_i32_0 = arith.constant 0 : i32
    %c0_i32_1 = arith.constant 0 : i32
    return %c0_i32, %c0_i32_0 : i32, i32
  }
  func.func @transform_4(%arg0: i32) -> (i32, i32) {
    %c0_i32 = arith.constant 0 : i32
    %c0_i32_0 = arith.constant 0 : i32
    %c0_i32_1 = arith.constant 0 : i32
    return %c0_i32, %c0_i32_0 : i32, i32
  }
  func.func @transform_5(%arg0: i32) -> (i32, i32) {
    %c0_i32 = arith.constant 0 : i32
    %c0_i32_0 = arith.constant 0 : i32
    return %arg0, %c0_i32 : i32, i32
  }
}

</mosaic_0001>

<bundles_post_ra>
// kernel: tpu_custom_call.1
= control target key start
LH: loop header
LB: loop body
LE: loop exit
PB: predicated region body
PF: predicated region fallthrough
CT: control target
= control target key end

     0   :  { %10 = vsyncpa [#allocation4], 0  ;;  %s564_s0 = inlined_call_operand.hbm [shape: f32[16,128], index: 0, kind: input, shape index: {}]   ;;  %s565_s1 = inlined_call_operand.hbm [shape: f32[128,128], index: 1, kind: input, shape index: {}]   ;;  %s566_s2 = inlined_call_operand.vmem [shape: f32[1,128], index: 2, kind: input, shape index: {}]   ;;  %s567_s3 = inlined_call_operand.hbm [shape: f32[128,128], index: 3, kind: input, shape index: {}]   ;;  %s568_s4 = inlined_call_operand.vmem [shape: f32[1,128], index: 4, kind: input, shape index: {}]   ;;  %s569_s5 = inlined_call_operand.hbm [shape: f32[16,128], index: 5, kind: output, shape index: {}]  }
   0x1   :  { %11 = vsyncpa [#allocation7], 0 }
   0x2   :  { %12 = vsyncpa [#allocation5], 0  ;;  %s498_s18 = smov [#allocation6]   ;;  %s499_s20 = smov [#allocation3]  }
   0x3   :  { %s30_s19 = sshll.u32 %s498_s18, 4  ;;  %s18_s21 = sshll.u32 %s499_s20, 4  ;;  %s31_s19 = int_to_ptr.vmem [resolvable:$true] %s30_s19  ;;  %s19_s21 = int_to_ptr.vmem [resolvable:$true] %s18_s21 }
   0x4   :  { %s420_s22 = scalar_lea.vmem %s31_s19, 2048  ;;  %p425_p1 = scmp.lt.s32.totalorder %s31_s19, %s31_s19 }
   0x5   :  { %p421_p0 = scmp.ne.s32.totalorder %s31_s19, %s420_s22  ;;  %p426_p2 = scmp.lt.s32.totalorder %s420_s22, %s420_s22 }
   0x7   :  { %p427_p3 = por %p426_p2, %p425_p1 }
   0x9   :  { %p428_p4 = pnand %p427_p3, %p421_p0 }
   0xb   :  { %431 = shalt.err (!%p428_p4)
}
   0xc   :  { %s500_s23 = smov 128   ;;  %s501_s24 = smov 8  }
   0xd   :  { %36 = dma.hbm_to_vmem [thread:$0]  %s565_s1, 2048, %s31_s19, [#allocation7], %s500_s23, %s500_s23, %s501_s24  }
   0xe   :  { %s440_s27 = scalar_lea.vmem %s19_s21, 256  ;;  %p445_p6 = scmp.lt.s32.totalorder %s19_s21, %s19_s21 }
   0xf   :  { %p441_p5 = scmp.ne.s32.totalorder %s19_s21, %s440_s27  ;;  %p446_p7 = scmp.lt.s32.totalorder %s440_s27, %s440_s27 }
  0x11   :  { %p447_p8 = por %p446_p7, %p445_p6 }
  0x13   :  { %p448_p9 = pnand %p447_p8, %p441_p5 }
  0x15   :  { %451 = shalt.err (!%p448_p9)
}
  0x16   :  { %24 = dma.hbm_to_vmem [thread:$0]  %s564_s0, 256, %s19_s21, [#allocation4], %s500_s23, %s500_s23, %s501_s24  }
  0x17   :  { %s502_s30 = smov [#allocation8]  }
  0x18   :  { %s44_s6 = sshll.u32 %s502_s30, 4  ;;  %s45_s6 = int_to_ptr.vmem [resolvable:$true] %s44_s6 }
  0x19   :  { %s460_s7 = scalar_lea.vmem %s45_s6, 2048  ;;  %p465_p11 = scmp.lt.s32.totalorder %s45_s6, %s45_s6 }
  0x1a   :  { %p461_p10 = scmp.ne.s32.totalorder %s45_s6, %s460_s7  ;;  %p466_p12 = scmp.lt.s32.totalorder %s460_s7, %s460_s7 }
  0x1c   :  { %p467_p13 = por %p466_p12, %p465_p11 }
  0x1e   :  { %p468_p0 = pnand %p467_p13, %p461_p10 }
  0x20   :  { %471 = shalt.err (!%p468_p0)
}
  0x21   :  { %50 = dma.hbm_to_vmem [thread:$0]  %s567_s3, 2048, %s45_s6, [#allocation7], %s500_s23, %s500_s23, %s501_s24  }
  0x22   :  { %492 = dma.done.wait [#allocation4], 256  }
  0x23   :  { %493 = vsyncadd [#allocation4], 4294967040 }
  0x24   :  { %494 = dma.done.wait [#allocation7], 4096  }
  0x25   :  { %495 = vsyncadd [#allocation7], 4294963200  ;;  %v79_v0 = vld [vmem:[#allocation6 + $0x78] sm:$0xff]  ;;  %v78_v1 = vld [vmem:[#allocation6 + $0x70] sm:$0xff]  ;;  %s503_s10 = smov [#allocation9]  }
  0x26   :  { %332 = vmatprep.subr.mxu0 %v79_v0  ;;  %v77_v2 = vld [vmem:[#allocation6 + $0x68] sm:$0xff]  ;;  %v76_v3 = vld [vmem:[#allocation6 + $0x60] sm:$0xff]  ;;  %v62_v4 = vld [vmem:[#allocation3] sm:$0xff]  ;;  %s281_s11 = sshll.u32 %s503_s10, 4  ;;  %s282_s11 = int_to_ptr.vmem [resolvable:$true] %s281_s11 }
  0x27   :  { %333 = vmatpush3.msra.mxu0 %v79_v0  ;;  %v75_v5 = vld [vmem:[#allocation6 + $0x58] sm:$0xff]  ;;  %364 = vmatprep.mubr.f32.mxu0 %v62_v4  ;;  %v190_v7 = vld [vmem:[#allocation8 + $0x70] sm:$0xff]  ;;  %v189_v9 = vld [vmem:[#allocation8 + $0x68] sm:$0xff]  ;;  %s472_s12 = scalar_lea.vmem %s282_s11, 256  ;;  %p477_p2 = scmp.lt.s32.totalorder %s282_s11, %s282_s11 }
  0x28   :  { %334 = vmatprep.subr.mxu0 %v78_v1  ;;  %v191_v6 = vld [vmem:[#allocation8 + $0x78] sm:$0xff]  ;;  %v74_v8 = vld [vmem:[#allocation6 + $0x50] sm:$0xff]  ;;  %v73_v10 = vld [vmem:[#allocation6 + $0x48] sm:$0xff]  ;;  %p473_p1 = scmp.ne.s32.totalorder %s282_s11, %s472_s12  ;;  %p478_p3 = scmp.lt.s32.totalorder %s472_s12, %s472_s12 }
  0x29   :  { %335 = vmatpush3.msra.mxu0 %v78_v1  ;;  %367 = vmatprep.subr.mxu1 %v191_v6  ;;  %v72_v11 = vld [vmem:[#allocation6 + $0x40] sm:$0xff]  ;;  %v71_v12 = vld [vmem:[#allocation6 + $0x38] sm:$0xff]  ;;  %v70_v13 = vld [vmem:[#allocation6 + $0x30] sm:$0xff] }
  0x2a   :  { %336 = vmatprep.subr.mxu0 %v77_v2  ;;  %368 = vmatpush3.msra.mxu1 %v191_v6  ;;  %v69_v14 = vld [vmem:[#allocation6 + $0x28] sm:$0xff]  ;;  %v68_v15 = vld [vmem:[#allocation6 + $0x20] sm:$0xff]  ;;  %v67_v16 = vld [vmem:[#allocation6 + $0x18] sm:$0xff]  ;;  %p479_p4 = por %p478_p3, %p477_p2 }
  0x2b   :  { %337 = vmatpush3.msra.mxu0 %v77_v2  ;;  %369 = vmatprep.subr.mxu1 %v190_v7  ;;  %v66_v17 = vld [vmem:[#allocation6 + $0x10] sm:$0xff]  ;;  %v65_v18 = vld [vmem:[#allocation6 + $0x8] sm:$0xff]  ;;  %v64_v19 = vld [vmem:[#allocation6] sm:$0xff] }
  0x2c   :  { %338 = vmatprep.subr.mxu0 %v76_v3  ;;  %370 = vmatpush3.msra.mxu1 %v190_v7  ;;  %v63_v20 = vld [vmem:[#allocation3 + $0x8] sm:$0xff]  ;;  %v188_v21 = vld [vmem:[#allocation8 + $0x60] sm:$0xff]  ;;  %v186_v23 = vld [vmem:[#allocation8 + $0x50] sm:$0xff]  ;;  %p480_p5 = pnand %p479_p4, %p473_p1 }
  0x2d   :  { %339 = vmatpush3.msra.mxu0 %v76_v3  ;;  %371 = vmatprep.subr.mxu1 %v189_v9  ;;  %v187_v22 = vld [vmem:[#allocation8 + $0x58] sm:$0xff]  ;;  %v185_v24 = vld [vmem:[#allocation8 + $0x48] sm:$0xff]  ;;  %v184_v25 = vld [vmem:[#allocation8 + $0x40] sm:$0xff] }
  0x2e   :  { %340 = vmatprep.subr.mxu0 %v75_v5  ;;  %372 = vmatpush3.msra.mxu1 %v189_v9  ;;  %v183_v26 = vld [vmem:[#allocation8 + $0x38] sm:$0xff]  ;;  %v182_v27 = vld [vmem:[#allocation8 + $0x30] sm:$0xff]  ;;  %v181_v28 = vld [vmem:[#allocation8 + $0x28] sm:$0xff] }
  0x2f   :  { %341 = vmatpush3.msra.mxu0 %v75_v5  ;;  %373 = vmatprep.subr.mxu1 %v188_v21  ;;  %v180_v29 = vld [vmem:[#allocation8 + $0x20] sm:$0xff]  ;;  %v179_v30 = vld [vmem:[#allocation8 + $0x18] sm:$0xff]  ;;  %v178_v31 = vld [vmem:[#allocation8 + $0x10] sm:$0xff] }
  0x30   :  { %342 = vmatprep.subr.mxu0 %v74_v8  ;;  %374 = vmatpush3.msra.mxu1 %v188_v21  ;;  %v177_v32 = vld [vmem:[#allocation8 + $0x8] sm:$0xff]  ;;  %v176_v33 = vld [vmem:[#allocation8] sm:$0xff]  ;;  %v294_v34 = vld [vmem:[%s566_s2] ss:$0 sm:$0xff] }
  0x31   :  { %343 = vmatpush3.msra.mxu0 %v74_v8  ;;  %375 = vmatprep.subr.mxu1 %v187_v22  ;;  %v295_v49 = vld [vmem:[%s568_s4] ss:$0 sm:$0xff] }
  0x32   :  { %344 = vmatprep.subr.mxu0 %v73_v10  ;;  %376 = vmatpush3.msra.mxu1 %v187_v22 }
  0x33   :  { %345 = vmatpush3.msra.mxu0 %v73_v10  ;;  %377 = vmatprep.subr.mxu1 %v186_v23 }
  0x34   :  { %346 = vmatprep.subr.mxu0 %v72_v11  ;;  %378 = vmatpush3.msra.mxu1 %v186_v23 }
  0x35   :  { %347 = vmatpush3.msra.mxu0 %v72_v11  ;;  %379 = vmatprep.subr.mxu1 %v185_v24 }
  0x36   :  { %348 = vmatprep.subr.mxu0 %v71_v12  ;;  %380 = vmatpush3.msra.mxu1 %v185_v24 }
  0x37   :  { %349 = vmatpush3.msra.mxu0 %v71_v12  ;;  %381 = vmatprep.subr.mxu1 %v184_v25 }
  0x38   :  { %350 = vmatprep.subr.mxu0 %v70_v13  ;;  %382 = vmatpush3.msra.mxu1 %v184_v25 }
  0x39   :  { %351 = vmatpush3.msra.mxu0 %v70_v13  ;;  %383 = vmatprep.subr.mxu1 %v183_v26 }
  0x3a   :  { %352 = vmatprep.subr.mxu0 %v69_v14  ;;  %384 = vmatpush3.msra.mxu1 %v183_v26 }
  0x3b   :  { %353 = vmatpush3.msra.mxu0 %v69_v14  ;;  %385 = vmatprep.subr.mxu1 %v182_v27 }
  0x3c   :  { %354 = vmatprep.subr.mxu0 %v68_v15  ;;  %386 = vmatpush3.msra.mxu1 %v182_v27 }
  0x3d   :  { %355 = vmatpush3.msra.mxu0 %v68_v15  ;;  %387 = vmatprep.subr.mxu1 %v181_v28 }
  0x3e   :  { %356 = vmatprep.subr.mxu0 %v67_v16  ;;  %388 = vmatpush3.msra.mxu1 %v181_v28 }
  0x3f   :  { %357 = vmatpush3.msra.mxu0 %v67_v16  ;;  %389 = vmatprep.subr.mxu1 %v180_v29 }
  0x40   :  { %358 = vmatprep.subr.mxu0 %v66_v17  ;;  %390 = vmatpush3.msra.mxu1 %v180_v29 }
  0x41   :  { %359 = vmatpush3.msra.mxu0 %v66_v17  ;;  %391 = vmatprep.subr.mxu1 %v179_v30 }
  0x42   :  { %360 = vmatprep.subr.mxu0 %v65_v18  ;;  %392 = vmatpush3.msra.mxu1 %v179_v30 }
  0x43   :  { %361 = vmatpush3.msra.mxu0 %v65_v18  ;;  %393 = vmatprep.subr.mxu1 %v178_v31 }
  0x44   :  { %362 = vmatprep.subr.mxu0 %v64_v19  ;;  %394 = vmatpush3.msra.mxu1 %v178_v31 }
  0x45   :  { %363 = vmatpush3.msra.mxu0 %v64_v19  ;;  %395 = vmatprep.subr.mxu1 %v177_v32 }
  0x46   :  { %365 = vmatmul.mubr.f32.vlgmr.msra.gmra.mxu0 %v63_v20  ;;  %396 = vmatpush3.msra.mxu1 %v177_v32 }
  0x47   :  { %397 = vmatprep.subr.mxu1 %v176_v33 }
  0x48   :  { %398 = vmatpush3.msra.mxu1 %v176_v33 }
 0x106   :  { %v366_v35 = vpop.f32.mrf.mxu0 }
 0x107   :  { %v159_v36 = vadd.f32 %v366_v35, %v294_v34 }
 0x108   :  { %v153_v37 = vpop.f32.mrf.mxu0 }
 0x109   :  { %v165_v38 = vmul.f32 0.70710677, %v159_v36  ;;  %v154_v39 = vadd.f32 %v294_v34, %v153_v37  ;;  %v163_v46 = vmul.f32 0.5, %v159_v36 }
 0x10b   :  { %408 = verf.f32 %v165_v38  ;;  %v164_v40 = vmul.f32 0.70710677, %v154_v39  ;;  %v162_v44 = vmul.f32 0.5, %v154_v39 }
 0x10d   :  { %410 = verf.f32 %v164_v40 }
 0x118   :  { %v409_v41 = vpop.eup %408 }
 0x119   :  { %v169_v43 = vadd.f32 1.0, %v409_v41 }
 0x11a   :  { %v411_v42 = vpop.eup %410 }
 0x11b   :  { %v168_v45 = vadd.f32 1.0, %v411_v42  ;;  %v171_v48 = vmul.f32 %v169_v43, %v163_v46 }
 0x11d   :  { %v170_v47 = vmul.f32 %v168_v45, %v162_v44 }
 0x11f   :  { %399 = vmatprep.mubr.f32.mxu1 %v170_v47 }
 0x120   :  { %400 = vmatmul.mubr.f32.vlgmr.msra.gmra.mxu1 %v171_v48 }
 0x1e0   :  { %v401_v50 = vpop.f32.mrf.mxu1 }
 0x1e1   :  { %v271_v51 = vadd.f32 %v401_v50, %v295_v49 }
 0x1e2   :  { %v265_v52 = vpop.f32.mrf.mxu1 }
 0x1e3   :  { %275 = vst [vmem:[#allocation9 + $0x8] sm:$0xff] %v271_v51  ;;  %v266_v53 = vadd.f32 %v295_v49, %v265_v52 }
 0x1e5   :  { %274 = vst [vmem:[#allocation9] sm:$0xff] %v266_v53 }
 0x1e6   :  { %483 = shalt.err (!%p480_p5)
}
 0x1e7   :  { %287 = dma.vmem_to_hbm [thread:$0]  %s282_s11, 256, %s569_s5, [#allocation5], %s500_s23, %s500_s23, %s501_s24  }
 0x1e8   :  { %496 = dma.done.wait [#allocation5], 256  }
 0x1e9   :  { %497 = vsyncadd [#allocation5], 4294967040 }
 0x1ea   :  { %291 = vsyncpa [#allocation4], 1 }
 0x1eb   :  { %292 = vsyncpa [#allocation7], 1 }
 0x1ec   :  { %293 = vsyncpa [#allocation5], 1 }

// kernel: tpu_custom_call.1
= control target key start
LH: loop header
LB: loop body
LE: loop exit
PB: predicated region body
PF: predicated region fallthrough
CT: control target
= control target key end

     0   :  { %10 = vsyncpa [#allocation4], 0  ;;  %s564_s0 = inlined_call_operand.hbm [shape: f32[16,128], index: 0, kind: input, shape index: {}]   ;;  %s565_s1 = inlined_call_operand.hbm [shape: f32[128,128], index: 1, kind: input, shape index: {}]   ;;  %s566_s2 = inlined_call_operand.vmem [shape: f32[1,128], index: 2, kind: input, shape index: {}]   ;;  %s567_s3 = inlined_call_operand.hbm [shape: f32[128,128], index: 3, kind: input, shape index: {}]   ;;  %s568_s4 = inlined_call_operand.vmem [shape: f32[1,128], index: 4, kind: input, shape index: {}]   ;;  %s569_s5 = inlined_call_operand.hbm [shape: f32[16,128], index: 5, kind: output, shape index: {}]  }
   0x1   :  { %11 = vsyncpa [#allocation7], 0 }
   0x2   :  { %12 = vsyncpa [#allocation5], 0  ;;  %s498_s18 = smov [#allocation6]   ;;  %s499_s20 = smov [#allocation3]  }
   0x3   :  { %s30_s19 = sshll.u32 %s498_s18, 4  ;;  %s18_s21 = sshll.u32 %s499_s20, 4  ;;  %s31_s19 = int_to_ptr.vmem [resolvable:$true] %s30_s19  ;;  %s19_s21 = int_to_ptr.vmem [resolvable:$true] %s18_s21 }
   0x4   :  { %s420_s22 = scalar_lea.vmem %s31_s19, 2048  ;;  %p425_p1 = scmp.lt.s32.totalorder %s31_s19, %s31_s19 }
   0x5   :  { %p421_p0 = scmp.ne.s32.totalorder %s31_s19, %s420_s22  ;;  %p426_p2 = scmp.lt.s32.totalorder %s420_s22, %s420_s22 }
   0x7   :  { %p427_p3 = por %p426_p2, %p425_p1 }
   0x9   :  { %p428_p4 = pnand %p427_p3, %p421_p0 }
   0xb   :  { %431 = shalt.err (!%p428_p4)
}
   0xc   :  { %s500_s23 = smov 128   ;;  %s501_s24 = smov 8  }
   0xd   :  { %36 = dma.hbm_to_vmem [thread:$0]  %s565_s1, 2048, %s31_s19, [#allocation7], %s500_s23, %s500_s23, %s501_s24  }
   0xe   :  { %s440_s27 = scalar_lea.vmem %s19_s21, 256  ;;  %p445_p6 = scmp.lt.s32.totalorder %s19_s21, %s19_s21 }
   0xf   :  { %p441_p5 = scmp.ne.s32.totalorder %s19_s21, %s440_s27  ;;  %p446_p7 = scmp.lt.s32.totalorder %s440_s27, %s440_s27 }
  0x11   :  { %p447_p8 = por %p446_p7, %p445_p6 }
  0x13   :  { %p448_p9 = pnand %p447_p8, %p441_p5 }
  0x15   :  { %451 = shalt.err (!%p448_p9)
}
  0x16   :  { %24 = dma.hbm_to_vmem [thread:$0]  %s564_s0, 256, %s19_s21, [#allocation4], %s500_s23, %s500_s23, %s501_s24  }
  0x17   :  { %s502_s30 = smov [#allocation8]  }
  0x18   :  { %s44_s6 = sshll.u32 %s502_s30, 4  ;;  %s45_s6 = int_to_ptr.vmem [resolvable:$true] %s44_s6 }
  0x19   :  { %s460_s7 = scalar_lea.vmem %s45_s6, 2048  ;;  %p465_p11 = scmp.lt.s32.totalorder %s45_s6, %s45_s6 }
  0x1a   :  { %p461_p10 = scmp.ne.s32.totalorder %s45_s6, %s460_s7  ;;  %p466_p12 = scmp.lt.s32.totalorder %s460_s7, %s460_s7 }
  0x1c   :  { %p467_p13 = por %p466_p12, %p465_p11 }
  0x1e   :  { %p468_p0 = pnand %p467_p13, %p461_p10 }
  0x20   :  { %471 = shalt.err (!%p468_p0)
}
  0x21   :  { %50 = dma.hbm_to_vmem [thread:$0]  %s567_s3, 2048, %s45_s6, [#allocation7], %s500_s23, %s500_s23, %s501_s24  }
  0x22   :  { %492 = dma.done.wait [#allocation4], 256  }
  0x23   :  { %493 = vsyncadd [#allocation4], 4294967040 }
  0x24   :  { %494 = dma.done.wait [#allocation7], 4096  }
  0x25   :  { %495 = vsyncadd [#allocation7], 4294963200  ;;  %v79_v0 = vld [vmem:[#allocation6 + $0x78] sm:$0xff]  ;;  %v78_v1 = vld [vmem:[#allocation6 + $0x70] sm:$0xff]  ;;  %s503_s10 = smov [#allocation9]  }
  0x26   :  { %332 = vmatprep.subr.mxu0 %v79_v0  ;;  %v77_v2 = vld [vmem:[#allocation6 + $0x68] sm:$0xff]  ;;  %v76_v3 = vld [vmem:[#allocation6 + $0x60] sm:$0xff]  ;;  %v62_v4 = vld [vmem:[#allocation3] sm:$0xff]  ;;  %s281_s11 = sshll.u32 %s503_s10, 4  ;;  %s282_s11 = int_to_ptr.vmem [resolvable:$true] %s281_s11 }
  0x27   :  { %333 = vmatpush3.msra.mxu0 %v79_v0  ;;  %v75_v5 = vld [vmem:[#allocation6 + $0x58] sm:$0xff]  ;;  %364 = vmatprep.mubr.f32.mxu0 %v62_v4  ;;  %v190_v7 = vld [vmem:[#allocation8 + $0x70] sm:$0xff]  ;;  %v189_v9 = vld [vmem:[#allocation8 + $0x68] sm:$0xff]  ;;  %s472_s12 = scalar_lea.vmem %s282_s11, 256  ;;  %p477_p2 = scmp.lt.s32.totalorder %s282_s11, %s282_s11 }
  0x28   :  { %334 = vmatprep.subr.mxu0 %v78_v1  ;;  %v191_v6 = vld [vmem:[#allocation8 + $0x78] sm:$0xff]  ;;  %v74_v8 = vld [vmem:[#allocation6 + $0x50] sm:$0xff]  ;;  %v73_v10 = vld [vmem:[#allocation6 + $0x48] sm:$0xff]  ;;  %p473_p1 = scmp.ne.s32.totalorder %s282_s11, %s472_s12  ;;  %p478_p3 = scmp.lt.s32.totalorder %s472_s12, %s472_s12 }
  0x29   :  { %335 = vmatpush3.msra.mxu0 %v78_v1  ;;  %367 = vmatprep.subr.mxu1 %v191_v6  ;;  %v72_v11 = vld [vmem:[#allocation6 + $0x40] sm:$0xff]  ;;  %v71_v12 = vld [vmem:[#allocation6 + $0x38] sm:$0xff]  ;;  %v70_v13 = vld [vmem:[#allocation6 + $0x30] sm:$0xff] }
  0x2a   :  { %336 = vmatprep.subr.mxu0 %v77_v2  ;;  %368 = vmatpush3.msra.mxu1 %v191_v6  ;;  %v69_v14 = vld [vmem:[#allocation6 + $0x28] sm:$0xff]  ;;  %v68_v15 = vld [vmem:[#allocation6 + $0x20] sm:$0xff]  ;;  %v67_v16 = vld [vmem:[#allocation6 + $0x18] sm:$0xff]  ;;  %p479_p4 = por %p478_p3, %p477_p2 }
  0x2b   :  { %337 = vmatpush3.msra.mxu0 %v77_v2  ;;  %369 = vmatprep.subr.mxu1 %v190_v7  ;;  %v66_v17 = vld [vmem:[#allocation6 + $0x10] sm:$0xff]  ;;  %v65_v18 = vld [vmem:[#allocation6 + $0x8] sm:$0xff]  ;;  %v64_v19 = vld [vmem:[#allocation6] sm:$0xff] }
  0x2c   :  { %338 = vmatprep.subr.mxu0 %v76_v3  ;;  %370 = vmatpush3.msra.mxu1 %v190_v7  ;;  %v63_v20 = vld [vmem:[#allocation3 + $0x8] sm:$0xff]  ;;  %v188_v21 = vld [vmem:[#allocation8 + $0x60] sm:$0xff]  ;;  %v186_v23 = vld [vmem:[#allocation8 + $0x50] sm:$0xff]  ;;  %p480_p5 = pnand %p479_p4, %p473_p1 }
  0x2d   :  { %339 = vmatpush3.msra.mxu0 %v76_v3  ;;  %371 = vmatprep.subr.mxu1 %v189_v9  ;;  %v187_v22 = vld [vmem:[#allocation8 + $0x58] sm:$0xff]  ;;  %v185_v24 = vld [vmem:[#allocation8 + $0x48] sm:$0xff]  ;;  %v184_v25 = vld [vmem:[#allocation8 + $0x40] sm:$0xff] }
  0x2e   :  { %340 = vmatprep.subr.mxu0 %v75_v5  ;;  %372 = vmatpush3.msra.mxu1 %v189_v9  ;;  %v183_v26 = vld [vmem:[#allocation8 + $0x38] sm:$0xff]  ;;  %v182_v27 = vld [vmem:[#allocation8 + $0x30] sm:$0xff]  ;;  %v181_v28 = vld [vmem:[#allocation8 + $0x28] sm:$0xff] }
  0x2f   :  { %341 = vmatpush3.msra.mxu0 %v75_v5  ;;  %373 = vmatprep.subr.mxu1 %v188_v21  ;;  %v180_v29 = vld [vmem:[#allocation8 + $0x20] sm:$0xff]  ;;  %v179_v30 = vld [vmem:[#allocation8 + $0x18] sm:$0xff]  ;;  %v178_v31 = vld [vmem:[#allocation8 + $0x10] sm:$0xff] }
  0x30   :  { %342 = vmatprep.subr.mxu0 %v74_v8  ;;  %374 = vmatpush3.msra.mxu1 %v188_v21  ;;  %v177_v32 = vld [vmem:[#allocation8 + $0x8] sm:$0xff]  ;;  %v176_v33 = vld [vmem:[#allocation8] sm:$0xff]  ;;  %v294_v34 = vld [vmem:[%s566_s2] ss:$0 sm:$0xff] }
  0x31   :  { %343 = vmatpush3.msra.mxu0 %v74_v8  ;;  %375 = vmatprep.subr.mxu1 %v187_v22  ;;  %v295_v49 = vld [vmem:[%s568_s4] ss:$0 sm:$0xff] }
  0x32   :  { %344 = vmatprep.subr.mxu0 %v73_v10  ;;  %376 = vmatpush3.msra.mxu1 %v187_v22 }
  0x33   :  { %345 = vmatpush3.msra.mxu0 %v73_v10  ;;  %377 = vmatprep.subr.mxu1 %v186_v23 }
  0x34   :  { %346 = vmatprep.subr.mxu0 %v72_v11  ;;  %378 = vmatpush3.msra.mxu1 %v186_v23 }
  0x35   :  { %347 = vmatpush3.msra.mxu0 %v72_v11  ;;  %379 = vmatprep.subr.mxu1 %v185_v24 }
  0x36   :  { %348 = vmatprep.subr.mxu0 %v71_v12  ;;  %380 = vmatpush3.msra.mxu1 %v185_v24 }
  0x37   :  { %349 = vmatpush3.msra.mxu0 %v71_v12  ;;  %381 = vmatprep.subr.mxu1 %v184_v25 }
  0x38   :  { %350 = vmatprep.subr.mxu0 %v70_v13  ;;  %382 = vmatpush3.msra.mxu1 %v184_v25 }
  0x39   :  { %351 = vmatpush3.msra.mxu0 %v70_v13  ;;  %383 = vmatprep.subr.mxu1 %v183_v26 }
  0x3a   :  { %352 = vmatprep.subr.mxu0 %v69_v14  ;;  %384 = vmatpush3.msra.mxu1 %v183_v26 }
  0x3b   :  { %353 = vmatpush3.msra.mxu0 %v69_v14  ;;  %385 = vmatprep.subr.mxu1 %v182_v27 }
  0x3c   :  { %354 = vmatprep.subr.mxu0 %v68_v15  ;;  %386 = vmatpush3.msra.mxu1 %v182_v27 }
  0x3d   :  { %355 = vmatpush3.msra.mxu0 %v68_v15  ;;  %387 = vmatprep.subr.mxu1 %v181_v28 }
  0x3e   :  { %356 = vmatprep.subr.mxu0 %v67_v16  ;;  %388 = vmatpush3.msra.mxu1 %v181_v28 }
  0x3f   :  { %357 = vmatpush3.msra.mxu0 %v67_v16  ;;  %389 = vmatprep.subr.mxu1 %v180_v29 }
  0x40   :  { %358 = vmatprep.subr.mxu0 %v66_v17  ;;  %390 = vmatpush3.msra.mxu1 %v180_v29 }
  0x41   :  { %359 = vmatpush3.msra.mxu0 %v66_v17  ;;  %391 = vmatprep.subr.mxu1 %v179_v30 }
  0x42   :  { %360 = vmatprep.subr.mxu0 %v65_v18  ;;  %392 = vmatpush3.msra.mxu1 %v179_v30 }
  0x43   :  { %361 = vmatpush3.msra.mxu0 %v65_v18  ;;  %393 = vmatprep.subr.mxu1 %v178_v31 }
  0x44   :  { %362 = vmatprep.subr.mxu0 %v64_v19  ;;  %394 = vmatpush3.msra.mxu1 %v178_v31 }
  0x45   :  { %363 = vmatpush3.msra.mxu0 %v64_v19  ;;  %395 = vmatprep.subr.mxu1 %v177_v32 }
  0x46   :  { %365 = vmatmul.mubr.f32.vlgmr.msra.gmra.mxu0 %v63_v20  ;;  %396 = vmatpush3.msra.mxu1 %v177_v32 }
  0x47   :  { %397 = vmatprep.subr.mxu1 %v176_v33 }
  0x48   :  { %398 = vmatpush3.msra.mxu1 %v176_v33 }
 0x106   :  { %v366_v35 = vpop.f32.mrf.mxu0 }
 0x107   :  { %v159_v36 = vadd.f32 %v366_v35, %v294_v34 }
 0x108   :  { %v153_v37 = vpop.f32.mrf.mxu0 }
 0x109   :  { %v165_v38 = vmul.f32 0.70710677, %v159_v36  ;;  %v154_v39 = vadd.f32 %v294_v34, %v153_v37  ;;  %v163_v46 = vmul.f32 0.5, %v159_v36 }
 0x10b   :  { %408 = verf.f32 %v165_v38  ;;  %v164_v40 = vmul.f32 0.70710677, %v154_v39  ;;  %v162_v44 = vmul.f32 0.5, %v154_v39 }
 0x10d   :  { %410 = verf.f32 %v164_v40 }
 0x118   :  { %v409_v41 = vpop.eup %408 }
 0x119   :  { %v169_v43 = vadd.f32 1.0, %v409_v41 }
 0x11a   :  { %v411_v42 = vpop.eup %410 }
 0x11b   :  { %v168_v45 = vadd.f32 1.0, %v411_v42  ;;  %v171_v48 = vmul.f32 %v169_v43, %v163_v46 }
 0x11d   :  { %v170_v47 = vmul.f32 %v168_v45, %v162_v44 }
 0x11f   :  { %399 = vmatprep.mubr.f32.mxu1 %v170_v47 }
 0x120   :  { %400 = vmatmul.mubr.f32.vlgmr.msra.gmra.mxu1 %v171_v48 }
 0x1e0   :  { %v401_v50 = vpop.f32.mrf.mxu1 }
 0x1e1   :  { %v271_v51 = vadd.f32 %v401_v50, %v295_v49 }
 0x1e2   :  { %v265_v52 = vpop.f32.mrf.mxu1 }
 0x1e3   :  { %275 = vst [vmem:[#allocation9 + $0x8] sm:$0xff] %v271_v51  ;;  %v266_v53 = vadd.f32 %v295_v49, %v265_v52 }
 0x1e5   :  { %274 = vst [vmem:[#allocation9] sm:$0xff] %v266_v53 }
 0x1e6   :  { %483 = shalt.err (!%p480_p5)
}
 0x1e7   :  { %287 = dma.vmem_to_hbm [thread:$0]  %s282_s11, 256, %s569_s5, [#allocation5], %s500_s23, %s500_s23, %s501_s24  }
 0x1e8   :  { %496 = dma.done.wait [#allocation5], 256  }
 0x1e9   :  { %497 = vsyncadd [#allocation5], 4294967040 }
 0x1ea   :  { %291 = vsyncpa [#allocation4], 1 }
 0x1eb   :  { %292 = vsyncpa [#allocation7], 1 }
 0x1ec   :  { %293 = vsyncpa [#allocation5], 1 }

</bundles_post_ra>
